<compile_context>
chip_gen: v5e
topology: v5e:2x2
jax: 0.10.0
libtpu: 0.0.40
codegen_flags: <defaults>
</compile_context>

<pallas_src>
import functools

import jax
import jax.numpy as jnp
from jax.experimental import pallas as pl
from jax.experimental.pallas import tpu as pltpu

HIDDEN = 1024


def _round_up(x, m):
    return (x + m - 1) // m * m


def ann_kernel(ids_ref, wf_ref, b1_ref, w2_ref, b2_ref, o_ref):
    """One batch tile: two-hot gather+Linear(Kp,H) + ReLU + Linear(H,1).

    ids: (TB, 2) i32 (col0 = uid, col1 = U + mid)
    wf:  (Kp, H) bf16 folded weights   b1: (1, H) f32
    w2:  (H, 128) bf16 (real column 0) b2: (1,) f32 in SMEM
    o:   (TB, 1) f32
    """
    TB = ids_ref.shape[0]
    Kp = wf_ref.shape[0]

    idx = ids_ref[...]                                   # (TB, 2) int32
    uid = idx[:, 0:1]                                    # (TB, 1)
    mof = idx[:, 1:2]                                    # (TB, 1), already U-offset

    # Two-hot mask: one iota, two compares, one OR.  Out-of-range ids silently
    # produce a zero row (same caveat as any one-hot gather).
    iota = jax.lax.broadcasted_iota(jnp.int32, (TB, Kp), 1)
    two_hot = jnp.logical_or(iota == uid, iota == mof).astype(jnp.bfloat16)

    # Layer 1 (gather + concat + Linear folded): K=128 bf16 MXU dot, f32 acc.
    h = jnp.dot(two_hot, wf_ref[...], preferred_element_type=jnp.float32)
    h = jnp.maximum(h + b1_ref[...], 0.0)                # (TB, H) f32

    # Layer 2 on the MXU: K=1024, N padded to 128 (real output in column 0).
    out = jnp.dot(h.astype(jnp.bfloat16), w2_ref[...],
                  preferred_element_type=jnp.float32)    # (TB, 128)
    o_ref[...] = out[:, 0:1] + b2_ref[0]


@functools.partial(jax.jit, static_argnames=("tb",))
def ann_forward(X, user_embed, movie_embed, w1, b1, w2, b2, tb=1024):
    """X: (B, 2) integer ids, col 0 = user ids, col 1 = movie ids."""
    B = X.shape[0]
    U, E = user_embed.shape
    M = movie_embed.shape[0]
    H = w1.shape[1]
    K = U + M
    Kp = _round_up(K, 128)

    # Fold the (tiny) embedding tables into layer 1 once, in f32, then cast to
    # bf16.  Zero-pad rows to a 128-multiple for the MXU.
    wu = jnp.dot(user_embed, w1[:E], precision=jax.lax.Precision.HIGHEST)   # (U, H)
    wm = jnp.dot(movie_embed, w1[E:], precision=jax.lax.Precision.HIGHEST)  # (M, H)
    wfold = jnp.zeros((Kp, H), jnp.float32).at[:U].set(wu).at[U:K].set(wm)
    wfold_bf = wfold.astype(jnp.bfloat16)

    # w2 as a lane-dense (H, 128) bf16 matrix, real column at index 0.
    w2pad_bf = jnp.zeros((H, 128), jnp.float32).at[:, 0:1].set(w2).astype(jnp.bfloat16)

    # Batch tiling: big tiles amortize per-grid-step overhead; cap near half
    # the padded batch for B >= 256 so the "parallel" axis has >= 2 steps
    # (v7x megacore).
    TB = min(tb, _round_up(B, 8))
    if B >= 256:
        TB = min(TB, max(128, _round_up(pl.cdiv(B, 2), 128)))
    Bp = _round_up(B, TB)

    ids = X.astype(jnp.int32)
    ids2 = jnp.stack([ids[:, 0], ids[:, 1] + U], axis=1)        # (B, 2)
    if Bp != B:
        ids2 = jnp.pad(ids2, ((0, Bp - B), (0, 0)))             # pad rows sliced off

    const2d = lambda i: (0, 0)  # resident across the whole grid (DMA'd once)
    out = pl.pallas_call(
        ann_kernel,
        out_shape=jax.ShapeDtypeStruct((Bp, 1), jnp.float32),
        grid=(Bp // TB,),
        in_specs=[
            pl.BlockSpec((TB, 2), lambda i: (i, 0)),            # ids: streamed
            pl.BlockSpec((Kp, H), const2d),                     # folded w (bf16)
            pl.BlockSpec((1, H), const2d),                      # b1 (f32)
            pl.BlockSpec((H, 128), const2d),                    # w2 padded (bf16)
            pl.BlockSpec(memory_space=pltpu.MemorySpace.SMEM),  # b2 scalar
        ],
        out_specs=pl.BlockSpec((TB, 1), lambda i: (i, 0)),
        compiler_params=pltpu.CompilerParams(
            dimension_semantics=("parallel",),
            vmem_limit_bytes=32 * 1024 * 1024),
    )(ids2, wfold_bf, b1.reshape(1, H), w2pad_bf, b2.reshape(1))
    return out[:B]


def init_params(key, U_dim, M_dim, embed_dim, hidden=HIDDEN):
    ks = jax.random.split(key, 6)
    # nn.Embedding default: N(0, 1)
    user_embed = jax.random.normal(ks[0], (U_dim, embed_dim), jnp.float32)
    movie_embed = jax.random.normal(ks[1], (M_dim, embed_dim), jnp.float32)
    # nn.Linear default: U(-1/sqrt(fan_in), 1/sqrt(fan_in)); weights stored (in, out)
    fan1 = 2 * embed_dim
    lim1 = 1.0 / jnp.sqrt(fan1)
    w1 = jax.random.uniform(ks[2], (fan1, hidden), jnp.float32, -lim1, lim1)
    b1 = jax.random.uniform(ks[3], (hidden,), jnp.float32, -lim1, lim1)
    lim2 = 1.0 / jnp.sqrt(hidden)
    w2 = jax.random.uniform(ks[4], (hidden, 1), jnp.float32, -lim2, lim2)
    b2 = jax.random.uniform(ks[5], (1,), jnp.float32, -lim2, lim2)
    return user_embed, movie_embed, w1, b1, w2, b2


def _reference_matched(X, params):
    # Same numeric path as the kernel (folded weights rounded to bf16, f32
    # accumulation, bf16 layer-2 operands) -> tight tolerance.
    ue, me, w1, b1, w2, b2 = params
    E = ue.shape[1]
    wu = jnp.dot(ue, w1[:E], precision=jax.lax.Precision.HIGHEST)
    wm = jnp.dot(me, w1[E:], precision=jax.lax.Precision.HIGHEST)
    h = (wu[X[:, 0]].astype(jnp.bfloat16).astype(jnp.float32)
         + wm[X[:, 1]].astype(jnp.bfloat16).astype(jnp.float32) + b1)
    h = jnp.maximum(h, 0.0)
    return jnp.dot(h.astype(jnp.bfloat16), w2.astype(jnp.bfloat16),
                   preferred_element_type=jnp.float32) + b2


def _reference_f32(X, params):
    # PyTorch-faithful full-f32 forward -> looser tolerance (bf16 weights in
    # the kernel).
    ue, me, w1, b1, w2, b2 = params
    x = jnp.concatenate([ue[X[:, 0]], me[X[:, 1]]], axis=1)
    h = jnp.dot(x, w1, precision=jax.lax.Precision.HIGHEST) + b1
    h = jnp.maximum(h, 0.0)
    return jnp.dot(h, w2, precision=jax.lax.Precision.HIGHEST) + b2


if __name__ == "__main__":
    U_dim, M_dim, embed_dim = 50, 40, 32

    key = jax.random.PRNGKey(0)
    pkey, xkey_u, xkey_m = jax.random.split(key, 3)
    params = init_params(pkey, U_dim, M_dim, embed_dim)

    def check(X, tb):
        out = jax.block_until_ready(ann_forward(X, *params, tb=tb))
        assert out.shape == (X.shape[0], 1)
        ref_m = _reference_matched(X, params)
        ref_f = _reference_f32(X, params)
        assert jnp.allclose(out, ref_m, atol=2e-3, rtol=2e-3)
        assert jnp.allclose(out, ref_f, atol=1e-2, rtol=1e-2)

    # Case 1: small batch, single tile.
    B = 8
    X = jnp.stack([jax.random.randint(xkey_u, (B,), 0, U_dim, dtype=jnp.int32),
                   jax.random.randint(xkey_m, (B,), 0, M_dim, dtype=jnp.int32)], axis=1)
    check(X, tb=1024)

    # Case 2: multiple batch tiles + non-divisible tail (grid + pad path).
    B2 = 20
    k_u2, k_m2 = jax.random.split(jax.random.PRNGKey(1))
    X2 = jnp.stack([jax.random.randint(k_u2, (B2,), 0, U_dim, dtype=jnp.int32),
                    jax.random.randint(k_m2, (B2,), 0, M_dim, dtype=jnp.int32)], axis=1)
    check(X2, tb=8)

    # Case 3: batch large enough to trigger the >=2-grid-step (megacore) cap.
    B3 = 300
    k_u3, k_m3 = jax.random.split(jax.random.PRNGKey(2))
    X3 = jnp.stack([jax.random.randint(k_u3, (B3,), 0, U_dim, dtype=jnp.int32),
                    jax.random.randint(k_m3, (B3,), 0, M_dim, dtype=jnp.int32)], axis=1)
    check(X3, tb=1024)

    print("KERNEL_OK")
</pallas_src>

<mosaic_0001>
module attributes {stable_mosaic.version = 11 : i64} {
  func.func @ann_kernel(%arg0: i32, %arg1: memref<8x2xi32, #tpu.memory_space<vmem>>, %arg2: memref<128x1024xbf16, #tpu.memory_space<vmem>>, %arg3: memref<1x1024xf32, #tpu.memory_space<vmem>>, %arg4: memref<1024x128xbf16, #tpu.memory_space<vmem>>, %arg5: memref<1xf32, #tpu.memory_space<smem>>, %arg6: memref<8x1xf32, #tpu.memory_space<vmem>>) attributes {dimension_semantics = [#tpu.dimension_semantics<parallel>], iteration_bounds = array<i64: 1>, scalar_prefetch = 0 : i64, scratch_operands = 0 : i64, tpu.core_type = #tpu.core_type<tc>, window_params = [{transform_indices = @transform_0, window_bounds = array<i64: 8, 2>}, {pipeline_mode = #tpu.pipeline_mode<synchronous>, transform_indices = @transform_1, window_bounds = array<i64: 128, 1024>}, {pipeline_mode = #tpu.pipeline_mode<synchronous>, transform_indices = @transform_2, window_bounds = array<i64: 1, 1024>}, {pipeline_mode = #tpu.pipeline_mode<synchronous>, transform_indices = @transform_3, window_bounds = array<i64: 1024, 128>}, {transform_indices = @transform_4, window_bounds = array<i64: 1>}, {transform_indices = @transform_5, window_bounds = array<i64: 8, 1>}]} {
    %c0 = arith.constant 0 : index
    %c0_0 = arith.constant 0 : index
    %0 = vector.load %arg1[%c0, %c0_0] : memref<8x2xi32, #tpu.memory_space<vmem>>, vector<8x2xi32>
    %1 = vector.extract_strided_slice %0 {offsets = [0, 0], sizes = [8, 1], strides = [1, 1]} : vector<8x2xi32> to vector<8x1xi32>
    %2 = vector.extract_strided_slice %0 {offsets = [0, 1], sizes = [8, 1], strides = [1, 1]} : vector<8x2xi32> to vector<8x1xi32>
    %3 = tpu.iota {dimensions = array<i32: 1>} : vector<8x128xi32>
    %4 = vector.broadcast %1 : vector<8x1xi32> to vector<8x128xi32>
    %5 = arith.cmpi eq, %3, %4 : vector<8x128xi32>
    %6 = vector.broadcast %2 : vector<8x1xi32> to vector<8x128xi32>
    %7 = arith.cmpi eq, %3, %6 : vector<8x128xi32>
    %8 = arith.ori %5, %7 : vector<8x128xi1>
    %9 = arith.extui %8 : vector<8x128xi1> to vector<8x128xi32>
    %10 = arith.sitofp %9 : vector<8x128xi32> to vector<8x128xf32>
    %11 = arith.truncf %10 : vector<8x128xf32> to vector<8x128xbf16>
    %c0_1 = arith.constant 0 : index
    %c0_2 = arith.constant 0 : index
    %12 = vector.load %arg2[%c0_1, %c0_2] : memref<128x1024xbf16, #tpu.memory_space<vmem>>, vector<128x1024xbf16>
    %cst = arith.constant dense<0.000000e+00> : vector<8x1024xf32>
    %13 = tpu.matmul %11, %12, %cst {dimension_numbers = #tpu.dot_dimension_numbers<[1], [0], [0], [1], [0, 0, 1, 1], [], []>} : vector<8x128xbf16>, vector<128x1024xbf16>, vector<8x1024xf32> -> vector<8x1024xf32>
    %c0_3 = arith.constant 0 : index
    %c0_4 = arith.constant 0 : index
    %14 = vector.load %arg3[%c0_3, %c0_4] : memref<1x1024xf32, #tpu.memory_space<vmem>>, vector<1x1024xf32>
    %15 = vector.broadcast %14 : vector<1x1024xf32> to vector<8x1024xf32>
    %16 = arith.addf %13, %15 : vector<8x1024xf32>
    %cst_5 = arith.constant 0.000000e+00 : f32
    %17 = vector.broadcast %cst_5 : f32 to vector<8x1024xf32>
    %18 = arith.maximumf %16, %17 : vector<8x1024xf32>
    %19 = arith.truncf %18 : vector<8x1024xf32> to vector<8x1024xbf16>
    %c0_6 = arith.constant 0 : index
    %c0_7 = arith.constant 0 : index
    %20 = vector.load %arg4[%c0_6, %c0_7] : memref<1024x128xbf16, #tpu.memory_space<vmem>>, vector<1024x128xbf16>
    %cst_8 = arith.constant dense<0.000000e+00> : vector<8x128xf32>
    %21 = tpu.matmul %19, %20, %cst_8 {dimension_numbers = #tpu.dot_dimension_numbers<[1], [0], [0], [1], [0, 0, 1, 1], [], []>} : vector<8x1024xbf16>, vector<1024x128xbf16>, vector<8x128xf32> -> vector<8x128xf32>
    %22 = vector.extract_strided_slice %21 {offsets = [0, 0], sizes = [8, 1], strides = [1, 1]} : vector<8x128xf32> to vector<8x1xf32>
    %c0_9 = arith.constant 0 : index
    %23 = memref.load %arg5[%c0_9] : memref<1xf32, #tpu.memory_space<smem>>
    %24 = vector.broadcast %23 : f32 to vector<8x1xf32>
    %25 = arith.addf %22, %24 : vector<8x1xf32>
    %c0_10 = arith.constant 0 : index
    %c0_11 = arith.constant 0 : index
    %26 = vector.load %arg6[%c0_10, %c0_11] : memref<8x1xf32, #tpu.memory_space<vmem>>, vector<8x1xf32>
    tpu.vector_store %arg6[%c0_10, %c0_11], %25 {strides = array<i32>} : memref<8x1xf32, #tpu.memory_space<vmem>>, vector<8x1xf32>,
    return
  }
  func.func @transform_0(%arg0: i32) -> (i32, i32) {
    %c0_i32 = arith.constant 0 : i32
    %c0_i32_0 = arith.constant 0 : i32
    return %arg0, %c0_i32 : i32, i32
  }
  func.func @transform_1(%arg0: i32) -> (i32, i32) {
    %c0_i32 = arith.constant 0 : i32
    %c0_i32_0 = arith.constant 0 : i32
    %c0_i32_1 = arith.constant 0 : i32
    return %c0_i32, %c0_i32_0 : i32, i32
  }
  func.func @transform_2(%arg0: i32) -> (i32, i32) {
    %c0_i32 = arith.constant 0 : i32
    %c0_i32_0 = arith.constant 0 : i32
    %c0_i32_1 = arith.constant 0 : i32
    return %c0_i32, %c0_i32_0 : i32, i32
  }
  func.func @transform_3(%arg0: i32) -> (i32, i32) {
    %c0_i32 = arith.constant 0 : i32
    %c0_i32_0 = arith.constant 0 : i32
    %c0_i32_1 = arith.constant 0 : i32
    return %c0_i32, %c0_i32_0 : i32, i32
  }
  func.func @transform_4(%arg0: i32) -> i32 {
    %c0_i32 = arith.constant 0 : i32
    %c0_i32_0 = arith.constant 0 : i32
    return %c0_i32 : i32
  }
  func.func @transform_5(%arg0: i32) -> (i32, i32) {
    %c0_i32 = arith.constant 0 : i32
    %c0_i32_0 = arith.constant 0 : i32
    return %arg0, %c0_i32 : i32, i32
  }
}

</mosaic_0001>

<bundles_post_ra>
// kernel: ann_forward.1
= control target key start
LH: loop header
LB: loop body
LE: loop exit
PB: predicated region body
PF: predicated region fallthrough
CT: control target
= control target key end

     0   :  { %v1845_v0 = vmov 0   ;;  %v1846_v38 = vmov 1   ;;  %vm1177_vm4 = vcmask 7168   ;;  %s2486_s0 = inlined_call_operand.vmem [shape: s32[8,2], index: 0, kind: input, shape index: {}]   ;;  %s2487_s1 = inlined_call_operand.vmem [shape: bf16[128,1024], index: 1, kind: input, shape index: {}]   ;;  %s2488_s3 = inlined_call_operand.vmem [shape: bf16[1024,128], index: 3, kind: input, shape index: {}]   ;;  %s2489_s2 = inlined_call_operand.vmem [shape: f32[1,1024], index: 2, kind: input, shape index: {}]   ;;  %s2490_s4 = inlined_call_operand.<no memory space> [shape: f32[1], index: 4, kind: input, shape index: {}]   ;;  %s2491_s5 = inlined_call_operand.vmem [shape: f32[8,1], index: 5, kind: output, shape index: {}]  }
   0x1   :  { %1843 = vset.pattern.permute.xlu0 %v1845_v0  ;;  %v21_v1 = vld [vmem:[%s2486_s0] sm:$0xff]  ;;  %v1418_v7 = vld [vmem:[%s2487_s1 + $0x1c8] sm:$0xf]  ;;  %v1769_v10 = vld [vmem:[%s2487_s1 + $0x1cc] sm:$0xf] }
   0x2   :  { %v1410_v2 = vld [vmem:[%s2487_s1 + $0x1c0] sm:$0xf]  ;;  %25 = vperm.xlu0 %1843, %v21_v1   ;;  %v1768_v5 = vld [vmem:[%s2487_s1 + $0x1c4] sm:$0xf]  ;;  %v1773_v9 = vld [vmem:[%s2487_s1 + $0x1e4] sm:$0xf0] }
   0x3   :  { %v1772_v3 = vld [vmem:[%s2487_s1 + $0x1dc] sm:$0xf0]  ;;  %v1412_v6 = vld [vmem:[%s2487_s1 + $0x1e0] sm:$0xf0]  ;;  %v1420_v11 = vld [vmem:[%s2487_s1 + $0x1e8] sm:$0xf0]  ;;  %v1419_v12 = vor.u32 %v1773_v9, %v1418_v7 }
   0x4   :  { %v1411_v4 = vor.u32 %v1772_v3, %v1410_v2  ;;  %v1415_v8 = vor.u32 %v1768_v5, %v1412_v6  ;;  %v1423_v13 = vor.u32 %v1769_v10, %v1420_v11  ;;  %v1378_v14 = vld [vmem:[%s2487_s1 + $0x180] sm:$0xf]  ;;  %v1760_v16 = vld [vmem:[%s2487_s1 + $0x184] sm:$0xf]  ;;  %v1386_v19 = vld [vmem:[%s2487_s1 + $0x188] sm:$0xf] }
   0x5   :  { %v1764_v15 = vld [vmem:[%s2487_s1 + $0x19c] sm:$0xf0]  ;;  %v1380_v18 = vld [vmem:[%s2487_s1 + $0x1a0] sm:$0xf0]  ;;  %v1765_v20 = vld [vmem:[%s2487_s1 + $0x1a4] sm:$0xf0]  ;;  %464 = vmatpush.bf16.msra.mxu2 %v1419_v12 }
   0x6   :  { %438 = vmatpush.bf16.msra.mxu0 %v1411_v4  ;;  %451 = vmatpush.bf16.msra.mxu1 %v1415_v8  ;;  %v1379_v17 = vor.u32 %v1764_v15, %v1378_v14  ;;  %v1383_v21 = vor.u32 %v1760_v16, %v1380_v18  ;;  %v1387_v22 = vor.u32 %v1765_v20, %v1386_v19  ;;  %v1761_v23 = vld [vmem:[%s2487_s1 + $0x18c] sm:$0xf]  ;;  %v1346_v25 = vld [vmem:[%s2487_s1 + $0x140] sm:$0xf]  ;;  %v1752_v28 = vld [vmem:[%s2487_s1 + $0x144] sm:$0xf] }
   0x7   :  { %477 = vmatpush.bf16.msra.mxu3 %v1423_v13  ;;  %v1388_v24 = vld [vmem:[%s2487_s1 + $0x1a8] sm:$0xf0]  ;;  %v1756_v27 = vld [vmem:[%s2487_s1 + $0x15c] sm:$0xf0]  ;;  %v1348_v29 = vld [vmem:[%s2487_s1 + $0x160] sm:$0xf0] }
   0x8   :  { %v1391_v26 = vor.u32 %v1761_v23, %v1388_v24  ;;  %v1347_v30 = vor.u32 %v1756_v27, %v1346_v25  ;;  %v1354_v31 = vld [vmem:[%s2487_s1 + $0x148] sm:$0xf]  ;;  %v1753_v33 = vld [vmem:[%s2487_s1 + $0x14c] sm:$0xf]  ;;  %v1351_v34 = vor.u32 %v1752_v28, %v1348_v29  ;;  %v1314_v36 = vld [vmem:[%s2487_s1 + $0x100] sm:$0xf] }
   0x9   :  { %v1757_v32 = vld [vmem:[%s2487_s1 + $0x164] sm:$0xf0]  ;;  %v1356_v35 = vld [vmem:[%s2487_s1 + $0x168] sm:$0xf0]  ;;  %v1748_v37 = vld [vmem:[%s2487_s1 + $0x11c] sm:$0xf0]  ;;  %465 = vmatpush.bf16.msra.mxu2 %v1387_v22 }
   0xa   :  { %439 = vmatpush.bf16.msra.mxu0 %v1379_v17  ;;  %452 = vmatpush.bf16.msra.mxu1 %v1383_v21  ;;  %v1355_v39 = vor.u32 %v1757_v32, %v1354_v31  ;;  %v1744_v40 = vld [vmem:[%s2487_s1 + $0x104] sm:$0xf]  ;;  %v1359_v42 = vor.u32 %v1753_v33, %v1356_v35  ;;  %v1322_v43 = vld [vmem:[%s2487_s1 + $0x108] sm:$0xf]  ;;  %v1315_v45 = vor.u32 %v1748_v37, %v1314_v36  ;;  %v1745_v46 = vld [vmem:[%s2487_s1 + $0x10c] sm:$0xf] }
   0xb   :  { %1844 = vset.pattern.permute.xlu0 %v1846_v38  ;;  %v1316_v41 = vld [vmem:[%s2487_s1 + $0x120] sm:$0xf0]  ;;  %478 = vmatpush.bf16.msra.mxu3 %v1391_v26  ;;  %v1749_v44 = vld [vmem:[%s2487_s1 + $0x124] sm:$0xf0]  ;;  %v1324_v47 = vld [vmem:[%s2487_s1 + $0x128] sm:$0xf0] }
   0xc   :  { %29 = vperm.xlu0 %1844, %v21_v1   ;;  %v1319_v48 = vor.u32 %v1744_v40, %v1316_v41  ;;  %v1282_v49 = vld [vmem:[%s2487_s1 + $0xc0] sm:$0xf]  ;;  %v1323_v51 = vor.u32 %v1749_v44, %v1322_v43  ;;  %v1736_v52 = vld [vmem:[%s2487_s1 + $0xc4] sm:$0xf]  ;;  %v1327_v54 = vor.u32 %v1745_v46, %v1324_v47  ;;  %v1290_v55 = vld [vmem:[%s2487_s1 + $0xc8] sm:$0xf] }
   0xd   :  { %v1740_v50 = vld [vmem:[%s2487_s1 + $0xdc] sm:$0xf0]  ;;  %466 = vmatpush.bf16.msra.mxu2 %v1355_v39  ;;  %v1284_v53 = vld [vmem:[%s2487_s1 + $0xe0] sm:$0xf0]  ;;  %v1741_v56 = vld [vmem:[%s2487_s1 + $0xe4] sm:$0xf0] }
   0xe   :  { %440 = vmatpush.bf16.msra.mxu0 %v1347_v30  ;;  %453 = vmatpush.bf16.msra.mxu1 %v1351_v34  ;;  %v1283_v57 = vor.u32 %v1740_v50, %v1282_v49  ;;  %v1737_v58 = vld [vmem:[%s2487_s1 + $0xcc] sm:$0xf]  ;;  %v1287_v60 = vor.u32 %v1736_v52, %v1284_v53  ;;  %v1250_v61 = vld [vmem:[%s2487_s1 + $0x80] sm:$0xf]  ;;  %v1291_v63 = vor.u32 %v1741_v56, %v1290_v55  ;;  %v1728_v0 = vld [vmem:[%s2487_s1 + $0x84] sm:$0xf] }
   0xf   :  { %479 = vmatpush.bf16.msra.mxu3 %v1359_v42  ;;  %v1292_v59 = vld [vmem:[%s2487_s1 + $0xe8] sm:$0xf0]  ;;  %v1732_v62 = vld [vmem:[%s2487_s1 + $0x9c] sm:$0xf0]  ;;  %v1252_v1 = vld [vmem:[%s2487_s1 + $0xa0] sm:$0xf0] }
  0x10   :  { %v1295_v2 = vor.u32 %v1737_v58, %v1292_v59  ;;  %v1258_v3 = vld [vmem:[%s2487_s1 + $0x88] sm:$0xf]  ;;  %v1251_v5 = vor.u32 %v1732_v62, %v1250_v61  ;;  %v1729_v6 = vld [vmem:[%s2487_s1 + $0x8c] sm:$0xf]  ;;  %v1255_v8 = vor.u32 %v1728_v0, %v1252_v1  ;;  %v1218_v9 = vld [vmem:[%s2487_s1 + $0x40] sm:$0xf] }
  0x11   :  { %467 = vmatpush.bf16.msra.mxu2 %v1323_v51  ;;  %v1733_v4 = vld [vmem:[%s2487_s1 + $0xa4] sm:$0xf0]  ;;  %v1260_v7 = vld [vmem:[%s2487_s1 + $0xa8] sm:$0xf0]  ;;  %v1724_v10 = vld [vmem:[%s2487_s1 + $0x5c] sm:$0xf0] }
  0x12   :  { %441 = vmatpush.bf16.msra.mxu0 %v1315_v45  ;;  %454 = vmatpush.bf16.msra.mxu1 %v1319_v48  ;;  %v1259_v11 = vor.u32 %v1733_v4, %v1258_v3  ;;  %v1720_v12 = vld [vmem:[%s2487_s1 + $0x44] sm:$0xf]  ;;  %v1263_v14 = vor.u32 %v1729_v6, %v1260_v7  ;;  %v1226_v15 = vld [vmem:[%s2487_s1 + $0x48] sm:$0xf]  ;;  %v1721_v17 = vld [vmem:[%s2487_s1 + $0x4c] sm:$0xf]  ;;  %v1219_v18 = vor.u32 %v1724_v10, %v1218_v9 }
  0x13   :  { %480 = vmatpush.bf16.msra.mxu3 %v1327_v54  ;;  %v1220_v13 = vld [vmem:[%s2487_s1 + $0x60] sm:$0xf0]  ;;  %v1725_v16 = vld [vmem:[%s2487_s1 + $0x64] sm:$0xf0]  ;;  %v1228_v19 = vld [vmem:[%s2487_s1 + $0x68] sm:$0xf0] }
  0x14   :  { %v1186_v20 = vld [vmem:[%s2487_s1] sm:$0xf]  ;;  %v1223_v22 = vor.u32 %v1720_v12, %v1220_v13  ;;  %v1712_v23 = vld [vmem:[%s2487_s1 + $0x4] sm:$0xf]  ;;  %v1194_v25 = vld [vmem:[%s2487_s1 + $0x8] sm:$0xf]  ;;  %v1227_v26 = vor.u32 %v1725_v16, %v1226_v15  ;;  %v1231_v30 = vor.u32 %v1721_v17, %v1228_v19 }
  0x15   :  { %468 = vmatpush.bf16.msra.mxu2 %v1291_v63  ;;  %v1716_v21 = vld [vmem:[%s2487_s1 + $0x1c] sm:$0xf0]  ;;  %v1188_v24 = vld [vmem:[%s2487_s1 + $0x20] sm:$0xf0]  ;;  %v1717_v27 = vld [vmem:[%s2487_s1 + $0x24] sm:$0xf0] }
  0x16   :  { %442 = vmatpush.bf16.msra.mxu0 %v1283_v57  ;;  %455 = vmatpush.bf16.msra.mxu1 %v1287_v60  ;;  %v1426_v28 = vld [vmem:[%s2487_s1 + $0x1d0] sm:$0xf]  ;;  %v1713_v31 = vld [vmem:[%s2487_s1 + $0xc] sm:$0xf]  ;;  %v1770_v32 = vld [vmem:[%s2487_s1 + $0x1d4] sm:$0xf]  ;;  %v1187_v34 = vor.u32 %v1716_v21, %v1186_v20  ;;  %v1191_v38 = vor.u32 %v1712_v23, %v1188_v24  ;;  %v1195_v42 = vor.u32 %v1717_v27, %v1194_v25 }
  0x17   :  { %481 = vmatpush.bf16.msra.mxu3 %v1295_v2  ;;  %v1774_v29 = vld [vmem:[%s2487_s1 + $0x1ec] sm:$0xf0]  ;;  %v1428_v33 = vld [vmem:[%s2487_s1 + $0x1f0] sm:$0xf0]  ;;  %v1196_v35 = vld [vmem:[%s2487_s1 + $0x28] sm:$0xf0] }
  0x18   :  { %v1434_v36 = vld [vmem:[%s2487_s1 + $0x1d8] sm:$0xf]  ;;  %v1427_v39 = vor.u32 %v1774_v29, %v1426_v28  ;;  %v1771_v40 = vld [vmem:[%s2487_s1 + $0x1dc] sm:$0xf]  ;;  %v1431_v43 = vor.u32 %v1770_v32, %v1428_v33  ;;  %v1199_v44 = vor.u32 %v1713_v31, %v1196_v35  ;;  %v1394_v47 = vld [vmem:[%s2487_s1 + $0x190] sm:$0xf] }
  0x19   :  { %469 = vmatpush.bf16.msra.mxu2 %v1259_v11  ;;  %v1775_v37 = vld [vmem:[%s2487_s1 + $0x1f4] sm:$0xf0]  ;;  %v1436_v41 = vld [vmem:[%s2487_s1 + $0x1f8] sm:$0xf0]  ;;  %v1766_v48 = vld [vmem:[%s2487_s1 + $0x1ac] sm:$0xf0] }
  0x1a   :  { %443 = vmatpush.bf16.msra.mxu0 %v1251_v5  ;;  %456 = vmatpush.bf16.msra.mxu1 %v1255_v8  ;;  %v1435_v45 = vor.u32 %v1775_v37, %v1434_v36  ;;  %v1439_v46 = vor.u32 %v1771_v40, %v1436_v41  ;;  %v1762_v49 = vld [vmem:[%s2487_s1 + $0x194] sm:$0xf]  ;;  %v1395_v50 = vor.u32 %v1766_v48, %v1394_v47  ;;  %v1402_v52 = vld [vmem:[%s2487_s1 + $0x198] sm:$0xf]  ;;  %v1763_v56 = vld [vmem:[%s2487_s1 + $0x19c] sm:$0xf] }
  0x1b   :  { %482 = vmatpush.bf16.msra.mxu3 %v1263_v14  ;;  %v1396_v51 = vld [vmem:[%s2487_s1 + $0x1b0] sm:$0xf0]  ;;  %v1767_v53 = vld [vmem:[%s2487_s1 + $0x1b4] sm:$0xf0]  ;;  %v1404_v57 = vld [vmem:[%s2487_s1 + $0x1b8] sm:$0xf0] }
  0x1c   :  { %v1399_v54 = vor.u32 %v1762_v49, %v1396_v51  ;;  %v1403_v55 = vor.u32 %v1767_v53, %v1402_v52  ;;  %v1362_v58 = vld [vmem:[%s2487_s1 + $0x150] sm:$0xf]  ;;  %v1407_v59 = vor.u32 %v1763_v56, %v1404_v57  ;;  %v1754_v61 = vld [vmem:[%s2487_s1 + $0x154] sm:$0xf]  ;;  %v1370_v1 = vld [vmem:[%s2487_s1 + $0x158] sm:$0xf] }
  0x1d   :  { %470 = vmatpush.bf16.msra.mxu2 %v1227_v26  ;;  %v1758_v60 = vld [vmem:[%s2487_s1 + $0x16c] sm:$0xf0]  ;;  %v1364_v62 = vld [vmem:[%s2487_s1 + $0x170] sm:$0xf0]  ;;  %v1759_v2 = vld [vmem:[%s2487_s1 + $0x174] sm:$0xf0] }
  0x1e   :  { %444 = vmatpush.bf16.msra.mxu0 %v1219_v18  ;;  %457 = vmatpush.bf16.msra.mxu1 %v1223_v22  ;;  %v1363_v63 = vor.u32 %v1758_v60, %v1362_v58  ;;  %v1367_v0 = vor.u32 %v1754_v61, %v1364_v62  ;;  %v1755_v3 = vld [vmem:[%s2487_s1 + $0x15c] sm:$0xf]  ;;  %v1371_v4 = vor.u32 %v1759_v2, %v1370_v1  ;;  %v1330_v7 = vld [vmem:[%s2487_s1 + $0x110] sm:$0xf]  ;;  %v1746_v9 = vld [vmem:[%s2487_s1 + $0x114] sm:$0xf] }
  0x1f   :  { %483 = vmatpush.bf16.msra.mxu3 %v1231_v30  ;;  %v1372_v5 = vld [vmem:[%s2487_s1 + $0x178] sm:$0xf0]  ;;  %v1750_v8 = vld [vmem:[%s2487_s1 + $0x12c] sm:$0xf0]  ;;  %v1332_v11 = vld [vmem:[%s2487_s1 + $0x130] sm:$0xf0] }
  0x20   :  { %v1375_v6 = vor.u32 %v1755_v3, %v1372_v5  ;;  %v1331_v10 = vor.u32 %v1750_v8, %v1330_v7  ;;  %v1338_v12 = vld [vmem:[%s2487_s1 + $0x118] sm:$0xf]  ;;  %v1335_v14 = vor.u32 %v1746_v9, %v1332_v11  ;;  %v1747_v16 = vld [vmem:[%s2487_s1 + $0x11c] sm:$0xf]  ;;  %v1298_v19 = vld [vmem:[%s2487_s1 + $0xd0] sm:$0xf] }
  0x21   :  { %471 = vmatpush.bf16.msra.mxu2 %v1195_v42  ;;  %v1751_v13 = vld [vmem:[%s2487_s1 + $0x134] sm:$0xf0]  ;;  %v1340_v17 = vld [vmem:[%s2487_s1 + $0x138] sm:$0xf0]  ;;  %v1742_v20 = vld [vmem:[%s2487_s1 + $0xec] sm:$0xf0] }
  0x22   :  { %445 = vmatpush.bf16.msra.mxu0 %v1187_v34  ;;  %458 = vmatpush.bf16.msra.mxu1 %v1191_v38  ;;  %v1339_v15 = vor.u32 %v1751_v13, %v1338_v12  ;;  %v1343_v18 = vor.u32 %v1747_v16, %v1340_v17  ;;  %v1299_v21 = vor.u32 %v1742_v20, %v1298_v19  ;;  %v1738_v22 = vld [vmem:[%s2487_s1 + $0xd4] sm:$0xf]  ;;  %v1306_v24 = vld [vmem:[%s2487_s1 + $0xd8] sm:$0xf]  ;;  %v1739_v27 = vld [vmem:[%s2487_s1 + $0xdc] sm:$0xf] }
  0x23   :  { %484 = vmatpush.bf16.msra.mxu3 %v1199_v44  ;;  %v1300_v23 = vld [vmem:[%s2487_s1 + $0xf0] sm:$0xf0]  ;;  %v1743_v26 = vld [vmem:[%s2487_s1 + $0xf4] sm:$0xf0]  ;;  %v1308_v28 = vld [vmem:[%s2487_s1 + $0xf8] sm:$0xf0] }
  0x24   :  { %v1303_v25 = vor.u32 %v1738_v22, %v1300_v23  ;;  %v1307_v29 = vor.u32 %v1743_v26, %v1306_v24  ;;  %v1311_v30 = vor.u32 %v1739_v27, %v1308_v28  ;;  %v1266_v31 = vld [vmem:[%s2487_s1 + $0x90] sm:$0xf]  ;;  %v1730_v33 = vld [vmem:[%s2487_s1 + $0x94] sm:$0xf]  ;;  %v1274_v36 = vld [vmem:[%s2487_s1 + $0x98] sm:$0xf] }
  0x25   :  { %516 = vmatpush.bf16.msrb.mxu2 %v1435_v45  ;;  %v1734_v32 = vld [vmem:[%s2487_s1 + $0xac] sm:$0xf0]  ;;  %v1268_v35 = vld [vmem:[%s2487_s1 + $0xb0] sm:$0xf0]  ;;  %v1735_v37 = vld [vmem:[%s2487_s1 + $0xb4] sm:$0xf0] }
  0x26   :  { %490 = vmatpush.bf16.msrb.mxu0 %v1427_v39  ;;  %503 = vmatpush.bf16.msrb.mxu1 %v1431_v43  ;;  %v1267_v34 = vor.u32 %v1734_v32, %v1266_v31  ;;  %v1271_v38 = vor.u32 %v1730_v33, %v1268_v35  ;;  %v1275_v39 = vor.u32 %v1735_v37, %v1274_v36  ;;  %v1731_v40 = vld [vmem:[%s2487_s1 + $0x9c] sm:$0xf]  ;;  %v1234_v42 = vld [vmem:[%s2487_s1 + $0x50] sm:$0xf]  ;;  %v1722_v45 = vld [vmem:[%s2487_s1 + $0x54] sm:$0xf] }
  0x27   :  { %529 = vmatpush.bf16.msrb.mxu3 %v1439_v46  ;;  %v1276_v41 = vld [vmem:[%s2487_s1 + $0xb8] sm:$0xf0]  ;;  %v1726_v44 = vld [vmem:[%s2487_s1 + $0x6c] sm:$0xf0]  ;;  %v1236_v46 = vld [vmem:[%s2487_s1 + $0x70] sm:$0xf0] }
  0x28   :  { %v1279_v43 = vor.u32 %v1731_v40, %v1276_v41  ;;  %v1235_v47 = vor.u32 %v1726_v44, %v1234_v42  ;;  %v1242_v48 = vld [vmem:[%s2487_s1 + $0x58] sm:$0xf]  ;;  %v1239_v51 = vor.u32 %v1722_v45, %v1236_v46  ;;  %v1244_v52 = vld [vmem:[%s2487_s1 + $0x78] sm:$0xf0]  ;;  %v1202_v53 = vld [vmem:[%s2487_s1 + $0x10] sm:$0xf] }
  0x29   :  { %517 = vmatpush.bf16.msrb.mxu2 %v1403_v55  ;;  %v1727_v49 = vld [vmem:[%s2487_s1 + $0x74] sm:$0xf0]  ;;  %v1714_v57 = vld [vmem:[%s2487_s1 + $0x14] sm:$0xf]  ;;  %v1715_v61 = vld [vmem:[%s2487_s1 + $0x1c] sm:$0xf] }
  0x2a   :  { %491 = vmatpush.bf16.msrb.mxu0 %v1395_v50  ;;  %504 = vmatpush.bf16.msrb.mxu1 %v1399_v54  ;;  %v1723_v50 = vld [vmem:[%s2487_s1 + $0x5c] sm:$0xf]  ;;  %v1718_v54 = vld [vmem:[%s2487_s1 + $0x2c] sm:$0xf0]  ;;  %v1243_v55 = vor.u32 %v1727_v49, %v1242_v48  ;;  %v1204_v58 = vld [vmem:[%s2487_s1 + $0x30] sm:$0xf0] }
  0x2b   :  { %530 = vmatpush.bf16.msrb.mxu3 %v1407_v59  ;;  %v1247_v56 = vor.u32 %v1723_v50, %v1244_v52  ;;  %v1210_v59 = vld [vmem:[%s2487_s1 + $0x18] sm:$0xf]  ;;  %v1212_v62 = vld [vmem:[%s2487_s1 + $0x38] sm:$0xf0]  ;;  %v1847_v12 = vmov 1.0|1.0  }
  0x2c   :  { %v1719_v60 = vld [vmem:[%s2487_s1 + $0x34] sm:$0xf0]  ;;  %v1215_v2 = vor.u32 %v1715_v61, %v1212_v62  ;;  %v1782_v13 = vld [vmem:[%s2488_s3 + $0x30] sm:$0xff]  ;;  %v1781_v17 = vld [vmem:[%s2488_s3 + $0x28] sm:$0xff] }
  0x2d   :  { %518 = vmatpush.bf16.msrb.mxu2 %v1371_v4  ;;  %v1211_v1 = vor.u32 %v1719_v60, %v1210_v59  ;;  %v22_v4 = vlaneseq  ;;  %v1783_v7 = vld [vmem:[%s2488_s3 + $0x38] sm:$0xff]  ;;  %v1806_v16 = vld [vmem:[%s2488_s3 + $0xf0] sm:$0xff]  ;;  %v1797_v19 = vld [vmem:[%s2488_s3 + $0xa8] sm:$0xff] }
  0x2e   :  { %492 = vmatpush.bf16.msrb.mxu0 %v1363_v63  ;;  %505 = vmatpush.bf16.msrb.mxu1 %v1367_v0  ;;  %v1203_v63 = vor.u32 %v1718_v54, %v1202_v53  ;;  %v1207_v0 = vor.u32 %v1714_v57, %v1204_v58  ;;  %v1791_v8 = vld [vmem:[%s2488_s3 + $0x78] sm:$0xff]  ;;  %v1805_v20 = vld [vmem:[%s2488_s3 + $0xe8] sm:$0xff]  ;;  %v1788_v22 = vld [vmem:[%s2488_s3 + $0x60] sm:$0xff] }
  0x2f   :  { %531 = vmatpush.bf16.msrb.mxu3 %v1375_v6  ;;  %v23_v5 = vand.u32 127, %v22_v4  ;;  %v1807_v11 = vld [vmem:[%s2488_s3 + $0xf8] sm:$0xff]  ;;  %v1796_v23 = vld [vmem:[%s2488_s3 + $0xa0] sm:$0xff]  ;;  %v1794_v31 = vld [vmem:[%s2488_s3 + $0x90] sm:$0xff] }
  0x30   :  { %v1804_v24 = vld [vmem:[%s2488_s3 + $0xe0] sm:$0xff]  ;;  %v1787_v26 = vld [vmem:[%s2488_s3 + $0x58] sm:$0xff]  ;;  %v1802_v32 = vld [vmem:[%s2488_s3 + $0xd0] sm:$0xff] }
  0x31   :  { %519 = vmatpush.bf16.msrb.mxu2 %v1339_v15  ;;  %v1798_v15 = vld [vmem:[%s2488_s3 + $0xb0] sm:$0xff]  ;;  %v1795_v27 = vld [vmem:[%s2488_s3 + $0x98] sm:$0xff]  ;;  %v1777_v33 = vld [vmem:[%s2488_s3 + $0x8] sm:$0xff] }
  0x32   :  { %493 = vmatpush.bf16.msrb.mxu0 %v1331_v10  ;;  %506 = vmatpush.bf16.msrb.mxu1 %v1335_v14  ;;  %v1799_v10 = vld [vmem:[%s2488_s3 + $0xb8] sm:$0xff]  ;;  %v1790_v14 = vld [vmem:[%s2488_s3 + $0x70] sm:$0xff]  ;;  %v1793_v35 = vld [vmem:[%s2488_s3 + $0x88] sm:$0xff] }
  0x33   :  { %532 = vmatpush.bf16.msrb.mxu3 %v1343_v18  ;;  %v1789_v18 = vld [vmem:[%s2488_s3 + $0x68] sm:$0xff]  ;;  %v1803_v28 = vld [vmem:[%s2488_s3 + $0xd8] sm:$0xff]  ;;  %v1776_v37 = vld [vmem:[%s2488_s3] sm:$0xff] }
  0x34   :  { %v1801_v36 = vld [vmem:[%s2488_s3 + $0xc8] sm:$0xff]  ;;  %v1823_v40 = vld [vmem:[%s2488_s3 + $0x178] sm:$0xff]  ;;  %v1792_v41 = vld [vmem:[%s2488_s3 + $0x80] sm:$0xff] }
  0x35   :  { %520 = vmatpush.bf16.msrb.mxu2 %v1307_v29  ;;  %v1778_v29 = vld [vmem:[%s2488_s3 + $0x10] sm:$0xff]  ;;  %v1800_v42 = vld [vmem:[%s2488_s3 + $0xc0] sm:$0xff]  ;;  %v1839_v44 = vld [vmem:[%s2488_s3 + $0x1f8] sm:$0xff] }
  0x36   :  { %494 = vmatpush.bf16.msrb.mxu0 %v1299_v21  ;;  %507 = vmatpush.bf16.msrb.mxu1 %v1303_v25  ;;  %v1780_v21 = vld [vmem:[%s2488_s3 + $0x20] sm:$0xff]  ;;  %v1779_v25 = vld [vmem:[%s2488_s3 + $0x18] sm:$0xff]  ;;  %v1814_v45 = vld [vmem:[%s2488_s3 + $0x130] sm:$0xff] }
  0x37   :  { %533 = vmatpush.bf16.msrb.mxu3 %v1311_v30  ;;  %v1786_v30 = vld [vmem:[%s2488_s3 + $0x50] sm:$0xff]  ;;  %v1821_v48 = vld [vmem:[%s2488_s3 + $0x168] sm:$0xff]  ;;  %v1820_v52 = vld [vmem:[%s2488_s3 + $0x160] sm:$0xff] }
  0x38   :  { %v1822_v46 = vld [vmem:[%s2488_s3 + $0x170] sm:$0xff]  ;;  %v1829_v53 = vld [vmem:[%s2488_s3 + $0x1a8] sm:$0xff]  ;;  %v1828_v57 = vld [vmem:[%s2488_s3 + $0x1a0] sm:$0xff] }
  0x39   :  { %521 = vmatpush.bf16.msrb.mxu2 %v1275_v39  ;;  %v1815_v39 = vld [vmem:[%s2488_s3 + $0x138] sm:$0xff]  ;;  %v1830_v49 = vld [vmem:[%s2488_s3 + $0x1b0] sm:$0xff]  ;;  %v1837_v54 = vld [vmem:[%s2488_s3 + $0x1e8] sm:$0xff] }
  0x3a   :  { %495 = vmatpush.bf16.msrb.mxu0 %v1267_v34  ;;  %508 = vmatpush.bf16.msrb.mxu1 %v1271_v38  ;;  %v1785_v34 = vld [vmem:[%s2488_s3 + $0x48] sm:$0xff]  ;;  %v1784_v38 = vld [vmem:[%s2488_s3 + $0x40] sm:$0xff]  ;;  %v1838_v50 = vld [vmem:[%s2488_s3 + $0x1f0] sm:$0xff] }
  0x3b   :  { %534 = vmatpush.bf16.msrb.mxu3 %v1279_v43  ;;  %v1831_v43 = vld [vmem:[%s2488_s3 + $0x1b8] sm:$0xff]  ;;  %v1836_v58 = vld [vmem:[%s2488_s3 + $0x1e0] sm:$0xff]  ;;  %v1810_v59 = vld [vmem:[%s2488_s3 + $0x110] sm:$0xff] }
  0x3c   :  { %v1818_v60 = vld [vmem:[%s2488_s3 + $0x150] sm:$0xff]  ;;  %v1827_v61 = vld [vmem:[%s2488_s3 + $0x198] sm:$0xff]  ;;  %v1816_v4 = vld [vmem:[%s2488_s3 + $0x140] sm:$0xff] }
  0x3d   :  { %522 = vmatpush.bf16.msrb.mxu2 %v1243_v55  ;;  %v1811_v55 = vld [vmem:[%s2488_s3 + $0x118] sm:$0xff]  ;;  %v100_v9 = vld [vmem:[%s2489_s2] sm:$0xff] }
  0x3e   :  { %496 = vmatpush.bf16.msrb.mxu0 %v1235_v47  ;;  %509 = vmatpush.bf16.msrb.mxu1 %v1239_v51  ;;  %v1813_v47 = vld [vmem:[%s2488_s3 + $0x128] sm:$0xff]  ;;  %v1812_v51 = vld [vmem:[%s2488_s3 + $0x120] sm:$0xff]  ;;  %v1835_v62 = vld [vmem:[%s2488_s3 + $0x1d8] sm:$0xff] }
  0x3f   :  { %535 = vmatpush.bf16.msrb.mxu3 %v1247_v56  ;;  %v1819_v56 = vld [vmem:[%s2488_s3 + $0x158] sm:$0xff] }
  0x41   :  { %523 = vmatpush.bf16.msrb.mxu2 %v1211_v1  ;;  %v1826_v1 = vld [vmem:[%s2488_s3 + $0x190] sm:$0xff] }
  0x42   :  { %497 = vmatpush.bf16.msrb.mxu0 %v1203_v63  ;;  %510 = vmatpush.bf16.msrb.mxu1 %v1207_v0  ;;  %v1809_v63 = vld [vmem:[%s2488_s3 + $0x108] sm:$0xff] }
  0x43   :  { %536 = vmatpush.bf16.msrb.mxu3 %v1215_v2  ;;  %v1817_v0 = vld [vmem:[%s2488_s3 + $0x148] sm:$0xff]  ;;  %v1834_v2 = vld [vmem:[%s2488_s3 + $0x1d0] sm:$0xff] }
  0x74   :  { %v26_v3 = vpop.permute.xlu0 %25 }
  0x75   :  { %vm27_vm0 = vcmp.eq.s32.totalorder %v23_v5, %v26_v3  ;;  %v1808_v3 = vld [vmem:[%s2488_s3 + $0x100] sm:$0xff] }
  0x7e   :  { %v30_v6 = vpop.permute.xlu0 %29 }
  0x7f   :  { %vm31_vm1 = vcmp.eq.s32.totalorder %v23_v5, %v30_v6  ;;  %v1825_v5 = vld [vmem:[%s2488_s3 + $0x188] sm:$0xff] }
  0x80   :  { %vm32_vm2 = vmor %vm27_vm0, %vm31_vm1  ;;  %v1833_v6 = vld [vmem:[%s2488_s3 + $0x1c8] sm:$0xff] }
  0x81   :  { %vm2271_vm3 = vmpackc.low %vm32_vm2, %vm32_vm2 }
  0x82   :  { %1441 = vmatmul.msk.bf16.vlgmr.msra.gmra.mxu0 %vm2271_vm3, %v1847_v12  ;;  %1443 = vmatmul.msk.bf16.vlgmr.msra.gmra.mxu1 %vm2271_vm3, %v1847_v12 }
  0x83   :  { %1445 = vmatmul.msk.bf16.vlgmr.msra.gmra.mxu2 %vm2271_vm3, %v1847_v12  ;;  %1447 = vmatmul.msk.bf16.vlgmr.msra.gmra.mxu3 %vm2271_vm3, %v1847_v12 }
  0x84   :  { %1070 = vmatpush.bf16.msra.mxu0 %v1783_v7  ;;  %1083 = vmatpush.bf16.msra.mxu1 %v1791_v8  ;;  %v1824_v7 = vld [vmem:[%s2488_s3 + $0x180] sm:$0xff] }
  0x85   :  { %1096 = vmatpush.bf16.msra.mxu2 %v1799_v10  ;;  %1109 = vmatpush.bf16.msra.mxu3 %v1807_v11  ;;  %v1832_v8 = vld [vmem:[%s2488_s3 + $0x1c0] sm:$0xff]  ;;  %v102_v10 = vperm.slane %v100_v9, 0  ;;  %v103_v11 = vperm.slane %v100_v9, 1 }
  0x88   :  { %1071 = vmatpush.bf16.msra.mxu0 %v1782_v13  ;;  %1084 = vmatpush.bf16.msra.mxu1 %v1790_v14 }
  0x89   :  { %1097 = vmatpush.bf16.msra.mxu2 %v1798_v15  ;;  %1110 = vmatpush.bf16.msra.mxu3 %v1806_v16 }
  0x8c   :  { %1072 = vmatpush.bf16.msra.mxu0 %v1781_v17  ;;  %1085 = vmatpush.bf16.msra.mxu1 %v1789_v18  ;;  %v104_v18 = vperm.slane %v100_v9, 2 }
  0x8d   :  { %1098 = vmatpush.bf16.msra.mxu2 %v1797_v19  ;;  %1111 = vmatpush.bf16.msra.mxu3 %v1805_v20  ;;  %v105_v19 = vperm.slane %v100_v9, 3 }
  0x90   :  { %1073 = vmatpush.bf16.msra.mxu0 %v1780_v21  ;;  %1086 = vmatpush.bf16.msra.mxu1 %v1788_v22 }
  0x91   :  { %1099 = vmatpush.bf16.msra.mxu2 %v1796_v23  ;;  %1112 = vmatpush.bf16.msra.mxu3 %v1804_v24 }
  0x92   :  { %1449 = vmatmul.msk.bf16.vlgmr.msrb.gmra.mxu0 %vm2271_vm3, %v1847_v12  ;;  %1451 = vmatmul.msk.bf16.vlgmr.msrb.gmra.mxu1 %vm2271_vm3, %v1847_v12 }
  0x93   :  { %1453 = vmatmul.msk.bf16.vlgmr.msrb.gmra.mxu2 %vm2271_vm3, %v1847_v12  ;;  %1455 = vmatmul.msk.bf16.vlgmr.msrb.gmra.mxu3 %vm2271_vm3, %v1847_v12 }
  0x94   :  { %1074 = vmatpush.bf16.msra.mxu0 %v1779_v25  ;;  %1087 = vmatpush.bf16.msra.mxu1 %v1787_v26 }
  0x95   :  { %1100 = vmatpush.bf16.msra.mxu2 %v1795_v27  ;;  %1113 = vmatpush.bf16.msra.mxu3 %v1803_v28 }
  0x98   :  { %1075 = vmatpush.bf16.msra.mxu0 %v1778_v29  ;;  %1088 = vmatpush.bf16.msra.mxu1 %v1786_v30 }
  0x99   :  { %1101 = vmatpush.bf16.msra.mxu2 %v1794_v31  ;;  %1114 = vmatpush.bf16.msra.mxu3 %v1802_v32  ;;  %v106_v32 = vperm.slane %v100_v9, 4 }
  0x9c   :  { %1076 = vmatpush.bf16.msra.mxu0 %v1777_v33  ;;  %1089 = vmatpush.bf16.msra.mxu1 %v1785_v34  ;;  %v107_v33 = vperm.slane %v100_v9, 5 }
  0x9d   :  { %1102 = vmatpush.bf16.msra.mxu2 %v1793_v35  ;;  %1115 = vmatpush.bf16.msra.mxu3 %v1801_v36 }
  0xa0   :  { %1077 = vmatpush.bf16.msra.mxu0 %v1776_v37  ;;  %1090 = vmatpush.bf16.msra.mxu1 %v1784_v38 }
  0xa1   :  { %1103 = vmatpush.bf16.msra.mxu2 %v1792_v41  ;;  %1116 = vmatpush.bf16.msra.mxu3 %v1800_v42  ;;  %v108_v42 = vperm.slane %v100_v9, 6 }
  0xa4   :  { %1122 = vmatpush.bf16.msrb.mxu0 %v1815_v39  ;;  %1135 = vmatpush.bf16.msrb.mxu1 %v1823_v40 }
  0xa5   :  { %1148 = vmatpush.bf16.msrb.mxu2 %v1831_v43  ;;  %1161 = vmatpush.bf16.msrb.mxu3 %v1839_v44  ;;  %v109_v43 = vperm.slane %v100_v9, 7 }
  0xa8   :  { %1123 = vmatpush.bf16.msrb.mxu0 %v1814_v45  ;;  %1136 = vmatpush.bf16.msrb.mxu1 %v1822_v46 }
  0xa9   :  { %1149 = vmatpush.bf16.msrb.mxu2 %v1830_v49  ;;  %1162 = vmatpush.bf16.msrb.mxu3 %v1838_v50 }
  0xac   :  { %1124 = vmatpush.bf16.msrb.mxu0 %v1813_v47  ;;  %1137 = vmatpush.bf16.msrb.mxu1 %v1821_v48 }
  0xad   :  { %1150 = vmatpush.bf16.msrb.mxu2 %v1829_v53  ;;  %1163 = vmatpush.bf16.msrb.mxu3 %v1837_v54 }
  0xb0   :  { %1125 = vmatpush.bf16.msrb.mxu0 %v1812_v51  ;;  %1138 = vmatpush.bf16.msrb.mxu1 %v1820_v52 }
  0xb1   :  { %1151 = vmatpush.bf16.msrb.mxu2 %v1828_v57  ;;  %1164 = vmatpush.bf16.msrb.mxu3 %v1836_v58 }
  0xb4   :  { %1126 = vmatpush.bf16.msrb.mxu0 %v1811_v55  ;;  %1139 = vmatpush.bf16.msrb.mxu1 %v1819_v56 }
  0xb5   :  { %1152 = vmatpush.bf16.msrb.mxu2 %v1827_v61  ;;  %1165 = vmatpush.bf16.msrb.mxu3 %v1835_v62 }
  0xb8   :  { %1127 = vmatpush.bf16.msrb.mxu0 %v1810_v59  ;;  %1140 = vmatpush.bf16.msrb.mxu1 %v1818_v60 }
  0xb9   :  { %1153 = vmatpush.bf16.msrb.mxu2 %v1826_v1  ;;  %1166 = vmatpush.bf16.msrb.mxu3 %v1834_v2 }
  0xbc   :  { %1128 = vmatpush.bf16.msrb.mxu0 %v1809_v63  ;;  %1141 = vmatpush.bf16.msrb.mxu1 %v1817_v0 }
  0xbd   :  { %1154 = vmatpush.bf16.msrb.mxu2 %v1825_v5  ;;  %1167 = vmatpush.bf16.msrb.mxu3 %v1833_v6 }
  0xc0   :  { %1129 = vmatpush.bf16.msrb.mxu0 %v1808_v3  ;;  %1142 = vmatpush.bf16.msrb.mxu1 %v1816_v4 }
  0xc1   :  { %1155 = vmatpush.bf16.msrb.mxu2 %v1824_v7  ;;  %1168 = vmatpush.bf16.msrb.mxu3 %v1832_v8 }
  0xff   :  { %v447_v12 = vpop.f32.mrf.mxu0  ;;  %v460_v13 = vpop.f32.mrf.mxu1 }
 0x100   :  { %v448_v14 = vadd.f32 %v447_v12, %v102_v10  ;;  %v461_v15 = vadd.f32 %v460_v13, %v103_v11 }
 0x102   :  { %v542_v16 = vmax.f32 %v448_v14, 0.0  ;;  %v543_v17 = vmax.f32 %v461_v15, 0.0  ;;  %v1175_v14 = vstv %s2490_s4 }
 0x104   :  { %v550_v20 = vpack.c.bf16 %v542_v16, %v542_v16  ;;  %v551_v21 = vpack.c.bf16 %v543_v17, %v543_v17 }
 0x106   :  { %v473_v22 = vpop.f32.mrf.mxu2  ;;  %v486_v23 = vpop.f32.mrf.mxu3  ;;  %1078 = vmatmul.bf16.vlgmr.msra.gmra.mxu0 %v550_v20  ;;  %1091 = vmatmul.bf16.vlgmr.msra.gmra.mxu1 %v551_v21 }
 0x107   :  { %v474_v24 = vadd.f32 %v473_v22, %v104_v18  ;;  %v487_v25 = vadd.f32 %v486_v23, %v105_v19  ;;  %v449_v26 = vpop.f32.mrf.mxu0  ;;  %v462_v27 = vpop.f32.mrf.mxu1 }
 0x109   :  { %v544_v28 = vmax.f32 %v474_v24, 0.0  ;;  %v545_v29 = vmax.f32 %v487_v25, 0.0 }
 0x10b   :  { %v552_v30 = vpack.c.bf16 %v544_v28, %v544_v28  ;;  %v553_v31 = vpack.c.bf16 %v545_v29, %v545_v29 }
 0x10d   :  { %1104 = vmatmul.bf16.vlgmr.msra.gmra.mxu2 %v552_v30  ;;  %1117 = vmatmul.bf16.vlgmr.msra.gmra.mxu3 %v553_v31 }
 0x10e   :  { %v475_v34 = vpop.f32.mrf.mxu2  ;;  %v488_v35 = vpop.f32.mrf.mxu3 }
 0x10f   :  { %v499_v36 = vpop.f32.mrf.mxu0  ;;  %v512_v37 = vpop.f32.mrf.mxu1 }
 0x110   :  { %v500_v38 = vadd.f32 %v499_v36, %v106_v32  ;;  %v513_v39 = vadd.f32 %v512_v37, %v107_v33 }
 0x112   :  { %v546_v40 = vmax.f32 %v500_v38, 0.0  ;;  %v547_v41 = vmax.f32 %v513_v39, 0.0 }
 0x114   :  { %v554_v44 = vpack.c.bf16 %v546_v40, %v546_v40  ;;  %v555_v45 = vpack.c.bf16 %v547_v41, %v547_v41 }
 0x116   :  { %v525_v46 = vpop.f32.mrf.mxu2  ;;  %v538_v47 = vpop.f32.mrf.mxu3  ;;  %1130 = vmatmul.bf16.vlgmr.msrb.gmra.mxu0 %v554_v44  ;;  %1143 = vmatmul.bf16.vlgmr.msrb.gmra.mxu1 %v555_v45 }
 0x117   :  { %v526_v48 = vadd.f32 %v525_v46, %v108_v42  ;;  %v539_v49 = vadd.f32 %v538_v47, %v109_v43  ;;  %v501_v50 = vpop.f32.mrf.mxu0  ;;  %v514_v51 = vpop.f32.mrf.mxu1 }
 0x119   :  { %v548_v52 = vmax.f32 %v526_v48, 0.0  ;;  %v549_v53 = vmax.f32 %v539_v49, 0.0 }
 0x11b   :  { %v556_v54 = vpack.c.bf16 %v548_v52, %v548_v52  ;;  %v557_v55 = vpack.c.bf16 %v549_v53, %v549_v53 }
 0x11d   :  { %1156 = vmatmul.bf16.vlgmr.msrb.gmra.mxu2 %v556_v54  ;;  %1169 = vmatmul.bf16.vlgmr.msrb.gmra.mxu3 %v557_v55 }
 0x11e   :  { %v527_v56 = vpop.f32.mrf.mxu2  ;;  %v540_v57 = vpop.f32.mrf.mxu3 }
 0x183   :  { %v1079_v58 = vpop.f32.mrf.mxu0  ;;  %v1092_v59 = vpop.f32.mrf.mxu1 }
 0x184   :  { %v1093_v0 = vadd.f32 %v1092_v59, %v1079_v58 }
 0x18b   :  { %v1081_v60 = vpop.f32.mrf.mxu0  ;;  %v1094_v61 = vpop.f32.mrf.mxu1 }
 0x190   :  { %v1105_v62 = vpop.f32.mrf.mxu2  ;;  %v1118_v63 = vpop.f32.mrf.mxu3 }
 0x191   :  { %v1106_v1 = vadd.f32 %v1105_v62, %v1093_v0 }
 0x193   :  { %v1131_v2 = vpop.f32.mrf.mxu0  ;;  %v1144_v3 = vpop.f32.mrf.mxu1  ;;  %v1119_v4 = vadd.f32 %v1118_v63, %v1106_v1 }
 0x195   :  { %v1132_v7 = vadd.f32 %v1131_v2, %v1119_v4 }
 0x197   :  { %v1145_v10 = vadd.f32 %v1144_v3, %v1132_v7 }
 0x198   :  { %v1107_v5 = vpop.f32.mrf.mxu2  ;;  %v1120_v6 = vpop.f32.mrf.mxu3 }
 0x19b   :  { %v1133_v8 = vpop.f32.mrf.mxu0  ;;  %v1146_v9 = vpop.f32.mrf.mxu1 }
 0x1a0   :  { %v1157_v11 = vpop.f32.mrf.mxu2  ;;  %v1170_v12 = vpop.f32.mrf.mxu3 }
 0x1a1   :  { %v1158_v13 = vadd.f32 %v1157_v11, %v1145_v10 }
 0x1a3   :  { %v1171_v15 = vadd.f32 %v1170_v12, %v1158_v13 }
 0x1a5   :  { %v1176_v16 = vadd.f32 %v1175_v14, %v1171_v15 }
 0x1a7   :  { %1178 = vst.msk [vmem:[%s2491_s5] sm:$0xff] %vm1177_vm4, %v1176_v16 }
 0x1a8   :  { %v1159_v17 = vpop.f32.mrf.mxu2  ;;  %v1172_v18 = vpop.f32.mrf.mxu3 }

</bundles_post_ra>
